<compile_context>
chip_gen: v5e
topology: v5e:2x2
jax: 0.10.0
libtpu: 0.0.40
codegen_flags: <defaults>
</compile_context>

<pallas_src>
import functools

import jax
import jax.numpy as jnp
from jax.experimental import pallas as pl
from jax.experimental.pallas import tpu as pltpu


def _attention_kernel(x_ref, w_ref, b_ref, o_ref, *, batch, time_steps):
    # x_ref : (B*T, C)  rows grouped by batch element
    # w_ref : (C, C)    fc.weight, PyTorch layout (out_features, in_features)
    # b_ref : (1, C)    fc.bias
    # o_ref : (B*T, C)
    xr = x_ref[...]                                          # (B*T, C)

    # fc(x) = x @ W^T + b : contract in_features (last dim of BOTH operands),
    # f32 accumulation on the MXU. No w.T inside the kernel.
    a = jax.lax.dot_general(
        xr, w_ref[...],
        dimension_numbers=(((1,), (1,)), ((), ())),
        preferred_element_type=jnp.float32,
    ) + b_ref[...]                                           # (B*T, C)

    # softmax over channels (dim=2 in the PyTorch module) -- exact divide;
    # the EUP is nowhere near binding at these shapes.
    a = a - jnp.max(a, axis=-1, keepdims=True)
    e = jnp.exp(a)
    sm = e / jnp.sum(e, axis=-1, keepdims=True)              # (B*T, C)

    c = sm.shape[-1]
    # mean over time per batch element -> (B, C)
    att = jnp.mean(sm.reshape(batch, time_steps, c), axis=1)

    # Rescale in the rows layout: broadcast each batch's (1, C) attention row
    # across its T time rows (sublane broadcast; no lane replication).
    out = xr.reshape(batch, time_steps, c) * att[:, None, :]  # (B, T, C)
    o_ref[...] = out.reshape(batch * time_steps, c).astype(o_ref.dtype)


def attention_module(x, w, b):
    """Pallas TPU implementation of AttentionModule.forward.

    x : (B, T, C) float32
    w : (C, C)    float32  -- fc.weight (out_features, in_features)
    b : (C,)      float32  -- fc.bias
    """
    B, T, C = x.shape

    # Single tile / single grid step: the whole problem (a few KiB) lives in
    # VMEM at once. Block shapes equal the full array dims, so the (8,128)
    # divisibility constraint is satisfied trivially.
    x_rows = x.reshape(B * T, C)
    b2d = b.reshape(1, C)

    kernel = functools.partial(_attention_kernel, batch=B, time_steps=T)

    out_rows = pl.pallas_call(
        kernel,
        out_shape=jax.ShapeDtypeStruct((B * T, C), x.dtype),
        grid_spec=pltpu.PrefetchScalarGridSpec(
            num_scalar_prefetch=0,
            grid=(1,),
            in_specs=[
                pl.BlockSpec((B * T, C), lambda i: (0, 0)),
                pl.BlockSpec((C, C), lambda i: (0, 0)),
                pl.BlockSpec((1, C), lambda i: (0, 0)),
            ],
            out_specs=pl.BlockSpec((B * T, C), lambda i: (0, 0)),
        ),
        compiler_params=pltpu.CompilerParams(
            dimension_semantics=("arbitrary",),
        ),
    )(x_rows, w, b2d)

    return out_rows.reshape(B, T, C)


def _reference(x, w, b):
    a = jnp.einsum("btc,oc->bto", x, w) + b
    a = jax.nn.softmax(a, axis=2)
    a = jnp.mean(a, axis=1, keepdims=True)
    return x * a


if __name__ == "__main__":
    # Small shapes consistent with the module: input_shape = (channels, time_steps)
    B, T, C = 2, 8, 32

    key = jax.random.PRNGKey(0)
    kx, kw, kb = jax.random.split(key, 3)

    x = jax.random.normal(kx, (B, T, C), dtype=jnp.float32)

    # Deterministic synthetic init mimicking truncnorm(0, 10, scale=0.1):
    # nonnegative, clipped to [0, 1.0].
    w = jnp.clip(jnp.abs(jax.random.normal(kw, (C, C), dtype=jnp.float32)) * 0.1, 0.0, 1.0)
    # fc.bias keeps PyTorch's default init (uniform); deterministic synthetic here.
    bound = 1.0 / (C ** 0.5)
    bias = jax.random.uniform(kb, (C,), dtype=jnp.float32, minval=-bound, maxval=bound)

    out = attention_module(x, w, bias)
    out = jax.block_until_ready(out)

    ref = _reference(x, w, bias)
    assert out.shape == (B, T, C)
    assert jnp.allclose(out, ref, atol=1e-5, rtol=1e-5), "mismatch vs pure-JAX reference"

    print("KERNEL_OK")
</pallas_src>

<mosaic_0001>
module attributes {stable_mosaic.version = 11 : i64} {
  func.func @_attention_kernel(%arg0: i32, %arg1: memref<16x32xf32, #tpu.memory_space<vmem>>, %arg2: memref<32x32xf32, #tpu.memory_space<vmem>>, %arg3: memref<1x32xf32, #tpu.memory_space<vmem>>, %arg4: memref<16x32xf32, #tpu.memory_space<vmem>>) attributes {dimension_semantics = [#tpu.dimension_semantics<arbitrary>], iteration_bounds = array<i64: 1>, scalar_prefetch = 0 : i64, scratch_operands = 0 : i64, tpu.core_type = #tpu.core_type<tc>, window_params = [{pipeline_mode = #tpu.pipeline_mode<synchronous>, transform_indices = @transform_0, window_bounds = array<i64: 16, 32>}, {pipeline_mode = #tpu.pipeline_mode<synchronous>, transform_indices = @transform_1, window_bounds = array<i64: 32, 32>}, {pipeline_mode = #tpu.pipeline_mode<synchronous>, transform_indices = @transform_2, window_bounds = array<i64: 1, 32>}, {pipeline_mode = #tpu.pipeline_mode<synchronous>, transform_indices = @transform_3, window_bounds = array<i64: 16, 32>}]} {
    %c0 = arith.constant 0 : index
    %c0_0 = arith.constant 0 : index
    %0 = vector.load %arg1[%c0, %c0_0] : memref<16x32xf32, #tpu.memory_space<vmem>>, vector<16x32xf32>
    %c0_1 = arith.constant 0 : index
    %c0_2 = arith.constant 0 : index
    %1 = vector.load %arg2[%c0_1, %c0_2] : memref<32x32xf32, #tpu.memory_space<vmem>>, vector<32x32xf32>
    %cst = arith.constant dense<0.000000e+00> : vector<16x32xf32>
    %2 = tpu.matmul %0, %1, %cst {dimension_numbers = #tpu.dot_dimension_numbers<[1], [1], [0], [0], [0, 0, 1, 0], [], []>} : vector<16x32xf32>, vector<32x32xf32>, vector<16x32xf32> -> vector<16x32xf32>
    %c0_3 = arith.constant 0 : index
    %c0_4 = arith.constant 0 : index
    %3 = vector.load %arg3[%c0_3, %c0_4] : memref<1x32xf32, #tpu.memory_space<vmem>>, vector<1x32xf32>
    %4 = vector.broadcast %3 : vector<1x32xf32> to vector<16x32xf32>
    %5 = arith.addf %2, %4 : vector<16x32xf32>
    %cst_5 = arith.constant dense<0xFF800000> : vector<16xf32>
    %6 = vector.multi_reduction <maximumf>, %5, %cst_5 [1] : vector<16x32xf32> to vector<16xf32>
    %7 = vector.shape_cast %6 : vector<16xf32> to vector<16x1xf32>
    %8 = vector.broadcast %7 : vector<16x1xf32> to vector<16x32xf32>
    %9 = arith.subf %5, %8 : vector<16x32xf32>
    %10 = math.exp %9 : vector<16x32xf32>
    %cst_6 = arith.constant dense<0.000000e+00> : vector<16xf32>
    %11 = vector.multi_reduction <add>, %10, %cst_6 [1] : vector<16x32xf32> to vector<16xf32>
    %12 = vector.shape_cast %11 : vector<16xf32> to vector<16x1xf32>
    %13 = vector.broadcast %12 : vector<16x1xf32> to vector<16x32xf32>
    %14 = arith.divf %10, %13 : vector<16x32xf32>
    %15 = vector.shape_cast %14 : vector<16x32xf32> to vector<2x8x32xf32>
    %cst_7 = arith.constant dense<0.000000e+00> : vector<2x32xf32>
    %16 = vector.multi_reduction <add>, %15, %cst_7 [1] : vector<2x8x32xf32> to vector<2x32xf32>
    %cst_8 = arith.constant 8.000000e+00 : f32
    %17 = vector.broadcast %cst_8 : f32 to vector<2x32xf32>
    %18 = arith.divf %16, %17 : vector<2x32xf32>
    %19 = vector.shape_cast %0 : vector<16x32xf32> to vector<2x8x32xf32>
    %20 = vector.shape_cast %18 : vector<2x32xf32> to vector<2x1x32xf32>
    %21 = vector.broadcast %20 : vector<2x1x32xf32> to vector<2x8x32xf32>
    %22 = arith.mulf %19, %21 : vector<2x8x32xf32>
    %23 = vector.shape_cast %22 : vector<2x8x32xf32> to vector<16x32xf32>
    %c0_9 = arith.constant 0 : index
    %c0_10 = arith.constant 0 : index
    %24 = vector.load %arg4[%c0_9, %c0_10] : memref<16x32xf32, #tpu.memory_space<vmem>>, vector<16x32xf32>
    tpu.vector_store %arg4[%c0_9, %c0_10], %23 {strides = array<i32>} : memref<16x32xf32, #tpu.memory_space<vmem>>, vector<16x32xf32>,
    return
  }
  func.func @transform_0(%arg0: i32) -> (i32, i32) {
    %c0_i32 = arith.constant 0 : i32
    %c0_i32_0 = arith.constant 0 : i32
    %c0_i32_1 = arith.constant 0 : i32
    return %c0_i32, %c0_i32_0 : i32, i32
  }
  func.func @transform_1(%arg0: i32) -> (i32, i32) {
    %c0_i32 = arith.constant 0 : i32
    %c0_i32_0 = arith.constant 0 : i32
    %c0_i32_1 = arith.constant 0 : i32
    return %c0_i32, %c0_i32_0 : i32, i32
  }
  func.func @transform_2(%arg0: i32) -> (i32, i32) {
    %c0_i32 = arith.constant 0 : i32
    %c0_i32_0 = arith.constant 0 : i32
    %c0_i32_1 = arith.constant 0 : i32
    return %c0_i32, %c0_i32_0 : i32, i32
  }
  func.func @transform_3(%arg0: i32) -> (i32, i32) {
    %c0_i32 = arith.constant 0 : i32
    %c0_i32_0 = arith.constant 0 : i32
    %c0_i32_1 = arith.constant 0 : i32
    return %c0_i32, %c0_i32_0 : i32, i32
  }
}

</mosaic_0001>

<bundles_post_ra>
// kernel: tpu_custom_call.1
= control target key start
LH: loop header
LB: loop body
LE: loop exit
PB: predicated region body
PF: predicated region fallthrough
CT: control target
= control target key end

     0   :  { %8 = vsyncpa [#allocation3], 0  ;;  %s372_s0 = inlined_call_operand.hbm [shape: f32[16,32], index: 0, kind: input, shape index: {}]   ;;  %s373_s1 = inlined_call_operand.hbm [shape: f32[32,32], index: 1, kind: input, shape index: {}]   ;;  %s374_s2 = inlined_call_operand.vmem [shape: f32[1,32], index: 2, kind: input, shape index: {}]   ;;  %s375_s3 = inlined_call_operand.hbm [shape: f32[16,32], index: 3, kind: output, shape index: {}]  }
   0x1   :  { %9 = vsyncpa [#allocation6], 0 }
   0x2   :  { %10 = vsyncpa [#allocation4], 0  ;;  %s15_s14 = sshll.u32 %s372_s0, 4  ;;  %s299_s15 = smov [#allocation2]   ;;  %s16_s14 = int_to_ptr.hbm [resolvable:$true] %s15_s14 }
   0x3   :  { %s17_s16 = sshll.u32 %s299_s15, 4  ;;  %s28_s19 = sshll.u32 %s373_s1, 4  ;;  %s18_s16 = int_to_ptr.vmem [resolvable:$true] %s17_s16  ;;  %s29_s19 = int_to_ptr.hbm [resolvable:$true] %s28_s19 }
   0x4   :  { %s300_s20 = smov 128   ;;  %s301_s21 = smov 8  }
   0x5   :  { %23 = dma.hbm_to_vmem [thread:$0]  %s16_s14, 256, %s18_s16, [#allocation3], %s300_s20, %s300_s20, %s301_s21  }
   0x6   :  { %s302_s22 = smov [#allocation5]  }
   0x7   :  { %s30_s23 = sshll.u32 %s302_s22, 4  ;;  %s31_s23 = int_to_ptr.vmem [resolvable:$true] %s30_s23 }
   0x8   :  { %36 = dma.hbm_to_vmem [thread:$0]  %s29_s19, 512, %s31_s23, [#allocation6], %s300_s20, %s300_s20, %s301_s21  }
   0x9   :  { %293 = dma.done.wait [#allocation3], 256  }
   0xa   :  { %294 = vsyncadd [#allocation3], 4294967040 }
   0xb   :  { %295 = dma.done.wait [#allocation6], 512  }
   0xc   :  { %296 = vsyncadd [#allocation6], 4294966784  ;;  %vm57_vm0 = vcmask 261120   ;;  %v52_v0 = vld [vmem:[#allocation5 + $0x18] sm:$0xff]  ;;  %v51_v1 = vld [vmem:[#allocation5 + $0x10] sm:$0xff]  ;;  %v303_v24 = vmov 8.0  }
   0xd   :  { %194 = vmatpush.xpose.msk.msra.mxu0 %vm57_vm0, %v52_v0  ;;  %200 = vmatpush.xpose.msk.msra.mxu1 %vm57_vm0, %v52_v0  ;;  %v50_v2 = vld [vmem:[#allocation5 + $0x8] sm:$0xff]  ;;  %v49_v3 = vld [vmem:[#allocation5] sm:$0xff]  ;;  %v344_v4 = vld [vmem:[#allocation2] sm:$0xff]  ;;  %s180_s27 = sshll.u32 %s375_s3, 4  ;;  %s181_s27 = int_to_ptr.hbm [resolvable:$true] %s180_s27 }
   0xe   :  { %v347_v5 = vld [vmem:[#allocation2 + $0x8] sm:$0xff]  ;;  %v210_v6 = vld [vmem:[%s374_s2] ss:$0 sm:$0xff]  ;;  %s304_s2 = smov [#allocation7]  }
   0xf   :  { %s178_s24 = sshll.u32 %s304_s2, 4  ;;  %s179_s24 = int_to_ptr.vmem [resolvable:$true] %s178_s24 }
  0x11   :  { %195 = vmatpush.xpose.msk.msra.mxu0 %vm57_vm0, %v51_v1  ;;  %201 = vmatpush.xpose.msk.msra.mxu1 %vm57_vm0, %v51_v1 }
  0x15   :  { %196 = vmatpush.xpose.msk.msra.mxu0 %vm57_vm0, %v50_v2  ;;  %202 = vmatpush.xpose.msk.msra.mxu1 %vm57_vm0, %v50_v2 }
  0x19   :  { %197 = vmatpush.xpose.msk.msra.mxu0 %vm57_vm0, %v49_v3  ;;  %203 = vmatpush.xpose.msk.msra.mxu1 %vm57_vm0, %v49_v3 }
  0x1c   :  { %198 = vmatmul.msk.f32.vlgmr.msra.gmra.mxu0 %vm57_vm0, %v344_v4  ;;  %199 = vmatmul.msk.f32.vlgmr.msra.gmra.mxu1 %vm57_vm0, %v347_v5 }
  0x99   :  { %v93_v7 = vpop.f32.mrf.mxu0  ;;  %v96_v9 = vpop.f32.mrf.mxu1 }
  0x9a   :  { %v94_v8 = vadd.f32 %v210_v6, %v93_v7  ;;  %v97_v11 = vadd.f32 %v210_v6, %v96_v9 }
  0x9c   :  { %v99_v10 = vsel %vm57_vm0, %v94_v8, -inf  ;;  %v102_v12 = vsel %vm57_vm0, %v97_v11, -inf }
  0x9d   :  { %100 = vmax.xlane.f32.xlu0 %v99_v10 }
  0xa5   :  { %103 = vmax.xlane.f32.xlu0 %v102_v12 }
 0x110   :  { %v101_v13 = vpop.xlane.xlu0 %100 }
 0x111   :  { %v105_v14 = vsub.f32 %v94_v8, %v101_v13 }
 0x113   :  { %v107_v15 = vmul.f32 1.442695, %v105_v14 }
 0x115   :  { %211 = vpow2.f32 %v107_v15 }
 0x118   :  { %v104_v16 = vpop.xlane.xlu0 %103 }
 0x119   :  { %v106_v17 = vsub.f32 %v97_v11, %v104_v16 }
 0x11b   :  { %v212_v18 = vpop.eup %211  ;;  %v109_v19 = vmul.f32 1.442695, %v106_v17 }
 0x11c   :  { %v111_v20 = vsel %vm57_vm0, %v212_v18, 0.0 }
 0x11d   :  { %213 = vpow2.f32 %v109_v19  ;;  %112 = vadd.xlane.f32.xlu1 %v111_v20 }
 0x123   :  { %v214_v21 = vpop.eup %213 }
 0x124   :  { %v114_v22 = vsel %vm57_vm0, %v214_v21, 0.0 }
 0x125   :  { %115 = vadd.xlane.f32.xlu1 %v114_v22 }
 0x190   :  { %v113_v23 = vpop.xlane.xlu1 %112 }
 0x191   :  { %215 = vrcp.f32 %v113_v23  ;;  %v128_v30 = vand.u32 2147483648, %v113_v23  ;;  %v126_v32 = vand.u32 2147483647, %v113_v23  ;;  %vm122_vm2 = vweird.f32 %v113_v23 }
 0x192   :  { %217 = vrcp.f32 %v303_v24 }
 0x193   :  { %v129_v36 = vor.u32 1.1754944e-38, %v128_v30  ;;  %vm127_vm4 = vcmp.eq.f32.partialorder %v126_v32, 8.507059e+37 }
 0x197   :  { %v216_v25 = vpop.eup %215 }
 0x198   :  { %v118_v26 = vmul.f32 %v216_v25, %v113_v23  ;;  %v116_v27 = vpop.xlane.xlu1 %115  ;;  %v218_v29 = vpop.eup %217  ;;  %vm123_vm1 = vweird.f32 %v216_v25 }
 0x199   :  { %219 = vrcp.f32 %v116_v27  ;;  %v162_v34 = vmul.f32 8.0, %v218_v29  ;;  %vm124_vm3 = vmor %vm122_vm2, %vm123_vm1  ;;  %v143_v43 = vand.u32 2147483648, %v116_v27  ;;  %v141_v46 = vand.u32 2147483647, %v116_v27 }
 0x19a   :  { %v119_v28 = vsub.f32 1.0, %v118_v26  ;;  %vm137_vm6 = vweird.f32 %v116_v27  ;;  %vm166_vm9 = vweird.f32 %v218_v29 }
 0x19b   :  { %v163_v42 = vsub.f32 1.0, %v162_v34  ;;  %v144_v51 = vor.u32 1.1754944e-38, %v143_v43  ;;  %vm142_vm8 = vcmp.eq.f32.partialorder %v141_v46, 8.507059e+37 }
 0x19c   :  { %v120_v31 = vmul.f32 %v216_v25, %v119_v28 }
 0x19d   :  { %v164_v49 = vmul.f32 %v218_v29, %v163_v42 }
 0x19e   :  { %v121_v33 = vadd.f32 %v216_v25, %v120_v31 }
 0x19f   :  { %v220_v35 = vpop.eup %219  ;;  %v165_v56 = vadd.f32 %v218_v29, %v164_v49 }
 0x1a0   :  { %v125_v37 = vsel %vm124_vm3, %v216_v25, %v121_v33  ;;  %v133_v38 = vmul.f32 %v220_v35, %v116_v27  ;;  %vm138_vm5 = vweird.f32 %v220_v35 }
 0x1a1   :  { %v130_v39 = vsel %vm127_vm4, %v129_v36, %v125_v37  ;;  %vm139_vm7 = vmor %vm137_vm6, %vm138_vm5  ;;  %v167_v61 = vsel %vm166_vm9, %v218_v29, %v165_v56 }
 0x1a2   :  { %v131_v40 = vmul.f32 %v212_v18, %v130_v39  ;;  %v134_v41 = vsub.f32 1.0, %v133_v38 }
 0x1a4   :  { %v147_v44 = vsel %vm57_vm0, %v131_v40, 0.0  ;;  %v135_v45 = vmul.f32 %v220_v35, %v134_v41 }
 0x1a5   :  { %v148_v47 = vrot.slane %v147_v44, 4 }
 0x1a6   :  { %v136_v48 = vadd.f32 %v220_v35, %v135_v45 }
 0x1a7   :  { %v149_v50 = vadd.f32 %v148_v47, %v147_v44 }
 0x1a8   :  { %v140_v52 = vsel %vm139_vm7, %v220_v35, %v136_v48 }
 0x1a9   :  { %v150_v53 = vrot.slane %v149_v50, 2  ;;  %v145_v54 = vsel %vm142_vm8, %v144_v51, %v140_v52 }
 0x1aa   :  { %v146_v55 = vmul.f32 %v214_v21, %v145_v54 }
 0x1ab   :  { %v151_v57 = vadd.f32 %v150_v53, %v149_v50 }
 0x1ac   :  { %v154_v58 = vsel %vm57_vm0, %v146_v55, 0.0 }
 0x1ad   :  { %v155_v59 = vrot.slane %v154_v58, 4  ;;  %v152_v60 = vrot.slane %v151_v57, 1 }
 0x1af   :  { %v156_v62 = vadd.f32 %v155_v59, %v154_v58  ;;  %v153_v63 = vadd.f32 %v152_v60, %v151_v57 }
 0x1b1   :  { %v157_v0 = vrot.slane %v156_v62, 2  ;;  %v168_v1 = vmul.f32 %v167_v61, %v153_v63 }
 0x1b3   :  { %v158_v2 = vadd.f32 %v157_v0, %v156_v62  ;;  %v170_v3 = vmul.f32 %v168_v1, %v344_v4 }
 0x1b5   :  { %v159_v6 = vrot.slane %v158_v2, 1  ;;  %172 = vst.msk [vmem:[#allocation7] sm:$0xff] %vm57_vm0, %v170_v3 }
 0x1b7   :  { %v160_v7 = vadd.f32 %v159_v6, %v158_v2 }
 0x1b9   :  { %v169_v8 = vmul.f32 %v167_v61, %v160_v7 }
 0x1bb   :  { %v171_v9 = vmul.f32 %v169_v8, %v347_v5 }
 0x1bd   :  { %173 = vst.msk [vmem:[#allocation7 + $0x8] sm:$0xff] %vm57_vm0, %v171_v9 }
 0x1be   :  { %186 = dma.vmem_to_hbm [thread:$0]  %s179_s24, 256, %s181_s27, [#allocation4], %s300_s20, %s300_s20, %s301_s21  }
 0x1bf   :  { %297 = dma.done.wait [#allocation4], 256  }
 0x1c0   :  { %298 = vsyncadd [#allocation4], 4294967040 }
 0x1c1   :  { %191 = vsyncpa [#allocation3], 1 }
 0x1c2   :  { %192 = vsyncpa [#allocation6], 1 }
 0x1c3   :  { %193 = vsyncpa [#allocation4], 1 }

</bundles_post_ra>
